<compile_context>
chip_gen: v7x
topology: tpu7x:2x2x1
jax: 0.10.0
libtpu: 0.0.40
codegen_flags: <defaults>
</compile_context>

<pallas_src>
import math
from functools import partial

import jax
import jax.numpy as jnp
from jax.experimental import pallas as pl
from jax.experimental.pallas import tpu as pltpu

LANE = 128          # TPU lane width
BATCH_ALIGN = 16    # bf16 sublane packing; batch tiles rounded to this


def _round_up(x, m):
    return (x + m - 1) // m * m


def _detect_chip():
    kind = ""
    try:
        kind = jax.devices()[0].device_kind.lower()
    except Exception:
        pass
    vmem_bytes = 64 << 20  # conservative fallback (v7x per-TC VMEM)
    try:
        vmem_bytes = int(pltpu.get_tpu_info().vmem_capacity_bytes)
    except Exception:
        pass
    return dict(kind=kind, vmem_bytes=vmem_bytes,
                is_v5=("v5" in kind), is_v7=("v7" in kind))


# ----------------------------------------------------------------------------
# Pallas kernel: fused discriminator head on one [TB, K] batch tile
# ----------------------------------------------------------------------------
def _disc_kernel(x_ref,
                 wl_ref, bl_ref,          # logit weights   [1, K] f32, [1, 1] f32
                 w1_ref, b1_ref,          # fused 1st layer [K, 2*Hp] bf16, [1, 2*Hp] f32
                 w2_ref, b2_ref,          # block-diag 2nd  [2*Hp, 2*Pp] bf16, [1, 2*Pp] f32
                 d_ref, p_ref,
                 *, hp, pp, fuse_second):
    x = x_ref[...]                                   # [TB, K] bf16 (streamed)
    xf = x.astype(jnp.float32)

    # Width-1 discriminator logit on VPU + XLU: d = sum(x * wl_row, -1) + bl.
    d = jnp.sum(xf * wl_ref[...], axis=-1, keepdims=True) + bl_ref[...]
    d_ref[...] = d.astype(d_ref.dtype)

    # One MXU pass for both projection first layers (bf16 in, f32 accumulation).
    h = jnp.dot(x, w1_ref[...], preferred_element_type=jnp.float32) + b1_ref[...]
    h = jnp.maximum(h, 0.1 * h)                      # LeakyReLU(0.1) in f32 (v5e-safe)
    h = h.astype(jnp.bfloat16)

    if fuse_second:
        # v6e/v7x: one fully-utilized 256-wide MXU pass over the block-diagonal weight.
        p = jnp.dot(h, w2_ref[...], preferred_element_type=jnp.float32) + b2_ref[...]
        p_ref[...] = p.astype(p_ref.dtype)
    else:
        # v5e (4x128 MXU): run the two exact diagonal blocks, no zero work.
        p1 = (jnp.dot(h[:, :hp], w2_ref[:hp, :pp],
                      preferred_element_type=jnp.float32) + b2_ref[:, :pp])
        p2 = (jnp.dot(h[:, hp:], w2_ref[hp:2 * hp, pp:2 * pp],
                      preferred_element_type=jnp.float32) + b2_ref[:, pp:2 * pp])
        p_ref[:, :pp] = p1.astype(p_ref.dtype)
        p_ref[:, pp:] = p2.astype(p_ref.dtype)


# ----------------------------------------------------------------------------
# One-time JAX glue: pad hidden/project dims to lane multiples, fuse weights, cast to bf16
# ----------------------------------------------------------------------------
def prepare_params(params):
    wl, bl = params["wl"], params["bl"]        # [K,1], [1,1]
    w1a, b1a = params["w1a"], params["b1a"]    # [K,H], [1,H]
    w2a, b2a = params["w2a"], params["b2a"]    # [H,P], [1,P]
    w1b, b1b = params["w1b"], params["b1b"]
    w2b, b2b = params["w2b"], params["b2b"]

    K, H = w1a.shape
    P = w2a.shape[1]
    Hp = _round_up(H, LANE)
    Pp = _round_up(P, LANE)

    def pad2(w, rows, cols):
        return jnp.pad(w, ((0, rows - w.shape[0]), (0, cols - w.shape[1])))

    # Fused first layer (both projection branches): [K, 2*Hp], bf16 for the MXU.
    w1 = jnp.concatenate([pad2(w1a, K, Hp), pad2(w1b, K, Hp)], axis=1).astype(jnp.bfloat16)
    b1 = jnp.concatenate([pad2(b1a, 1, Hp), pad2(b1b, 1, Hp)], axis=1).astype(jnp.float32)

    # Block-diagonal second layer: [2*Hp, 2*Pp], bf16. Off-diagonal zeros contribute nothing.
    w2 = jnp.zeros((2 * Hp, 2 * Pp), jnp.float32)
    w2 = w2.at[:H, :P].set(w2a).at[Hp:Hp + H, Pp:Pp + P].set(w2b).astype(jnp.bfloat16)
    b2 = jnp.concatenate([pad2(b2a, 1, Pp), pad2(b2b, 1, Pp)], axis=1).astype(jnp.float32)

    return dict(
        wl=wl.T.astype(jnp.float32),   # [1, K] row for the VPU logit path (stays f32)
        bl=bl.astype(jnp.float32),     # [1, 1]
        w1=w1, b1=b1, w2=w2, b2=b2,
        K=K, H=H, Hp=Hp, P=P, Pp=Pp,
    )


# ----------------------------------------------------------------------------
# Forward wrapper
# ----------------------------------------------------------------------------
def base_discriminator_forward(features, prepared, *, block_b=None, out_dtype=jnp.float32):
    """features: [B, d_penul] float32. Returns (output, {'penultimate','projection','projection2'})."""
    B, K = features.shape
    assert K == prepared["K"], "feature dim mismatch"
    Hp, Pp, P = prepared["Hp"], prepared["Pp"], prepared["P"]

    chip = _detect_chip()
    if block_b is None:
        block_b = 512 if chip["is_v7"] else 1024   # v5e/v6e have 128 MiB VMEM -> larger tiles

    # Choose TB from B: bound padding waste (split B evenly over the needed tiles) and give
    # v7x megacore at least 2 tiles when the batch allows it.
    min_tiles = 2 if (chip["is_v7"] and B > BATCH_ALIGN) else 1
    n_tiles = max(pl.cdiv(B, block_b), min_tiles)
    TB = _round_up(pl.cdiv(B, n_tiles), BATCH_ALIGN)
    Bp = _round_up(B, TB)
    grid = (Bp // TB,)

    # Streamed input: bf16 (half the HBM bytes); K kept unpadded (block covers full K dim).
    x = features.astype(jnp.bfloat16)
    if Bp != B:
        x = jnp.pad(x, ((0, Bp - B), (0, 0)))

    # VMEM limit from the actual footprint (weights possibly double-buffered + 2x batch tiles),
    # capped with headroom against the detected per-core VMEM.
    weight_bytes = sum(int(prepared[k].size) * prepared[k].dtype.itemsize
                       for k in ("wl", "bl", "w1", "b1", "w2", "b2"))
    tile_bytes = TB * (K * 2 + 4 + 2 * Pp * jnp.dtype(out_dtype).itemsize)
    footprint = 2 * weight_bytes + 2 * tile_bytes
    vmem_limit = int(min(chip["vmem_bytes"] * 3 // 4,
                         max(footprint + (8 << 20), 32 << 20)))

    fuse_second = not chip["is_v5"]   # block-diag 256-wide fusion only pays off on 2x256 MXUs

    def _make_call(single_buffer_weights):
        w_kwargs = {}
        if single_buffer_weights:
            # Constant index_map -> weights are VMEM-resident; no need to double-buffer them.
            w_kwargs["pipeline_mode"] = pl.Buffered(1)

        def resident(shape):
            return pl.BlockSpec(shape, lambda i: (0, 0), **w_kwargs)

        return pl.pallas_call(
            partial(_disc_kernel, hp=Hp, pp=Pp, fuse_second=fuse_second),
            out_shape=(
                jax.ShapeDtypeStruct((Bp, 1), jnp.float32),
                jax.ShapeDtypeStruct((Bp, 2 * Pp), out_dtype),
            ),
            grid=grid,
            in_specs=[
                pl.BlockSpec((TB, K), lambda i: (i, 0)),   # batch-tiled streaming features
                resident((1, K)), resident((1, 1)),
                resident((K, 2 * Hp)), resident((1, 2 * Hp)),
                resident((2 * Hp, 2 * Pp)), resident((1, 2 * Pp)),
            ],
            out_specs=(
                pl.BlockSpec((TB, 1), lambda i: (i, 0)),
                pl.BlockSpec((TB, 2 * Pp), lambda i: (i, 0)),
            ),
            compiler_params=pltpu.CompilerParams(
                dimension_semantics=("parallel",),   # megacore sharding of batch tiles on v7x
                vmem_limit_bytes=vmem_limit,
            ),
        )

    args = (x, prepared["wl"], prepared["bl"], prepared["w1"], prepared["b1"],
            prepared["w2"], prepared["b2"])
    try:
        d, p = _make_call(True)(*args)
    except Exception:
        # pl.Buffered(1) not accepted by this jax/mosaic build -> default buffering.
        d, p = _make_call(False)(*args)

    output = d[:B]
    aux = {
        "penultimate": features,
        "projection": p[:B, :P],
        "projection2": p[:B, Pp:Pp + P],
    }
    return output, aux


# ----------------------------------------------------------------------------
# Deterministic parameter init (nn.Linear-style: U(-1/sqrt(fan_in), +1/sqrt(fan_in)))
# Weights stored transposed: [in_features, out_features].
# ----------------------------------------------------------------------------
def _init_linear(key, fan_in, fan_out):
    bound = 1.0 / math.sqrt(fan_in)
    kw, kb = jax.random.split(key)
    w = jax.random.uniform(kw, (fan_in, fan_out), jnp.float32, -bound, bound)
    b = jax.random.uniform(kb, (1, fan_out), jnp.float32, -bound, bound)
    return w, b


def make_params(key, d_penul, d_hidden, d_project):
    keys = jax.random.split(key, 5)
    wl, bl = _init_linear(keys[0], d_penul, 1)             # LinearDiscriminator.linear
    w1a, b1a = _init_linear(keys[1], d_penul, d_hidden)    # projection[0]
    w2a, b2a = _init_linear(keys[2], d_hidden, d_project)  # projection[2]
    w1b, b1b = _init_linear(keys[3], d_penul, d_hidden)    # projection2[0]
    w2b, b2b = _init_linear(keys[4], d_hidden, d_project)  # projection2[2]
    return dict(wl=wl, bl=bl, w1a=w1a, b1a=b1a, w2a=w2a, b2a=b2a,
                w1b=w1b, b1b=b1b, w2b=w2b, b2b=b2b)


# ----------------------------------------------------------------------------
# References
# ----------------------------------------------------------------------------
def _f32_reference(features, p):
    """Pure f32 reference (module semantics)."""
    def lrelu(x):
        return jnp.maximum(x, 0.1 * x)
    d = features @ p["wl"] + p["bl"]
    p1 = lrelu(features @ p["w1a"] + p["b1a"]) @ p["w2a"] + p["b2a"]
    p2 = lrelu(features @ p["w1b"] + p["b1b"]) @ p["w2b"] + p["b2b"]
    return d, p1, p2


def _matched_reference(features, p):
    """Mirrors the kernel's precision choices (bf16 operands, f32 accumulation)."""
    x_bf = features.astype(jnp.bfloat16)
    xf = x_bf.astype(jnp.float32)
    d = jnp.sum(xf * p["wl"][:, 0][None, :], axis=-1, keepdims=True) + p["bl"]

    def branch(w1, b1, w2, b2):
        h = jnp.dot(x_bf, w1.astype(jnp.bfloat16),
                    preferred_element_type=jnp.float32) + b1
        h = jnp.maximum(h, 0.1 * h).astype(jnp.bfloat16)
        return jnp.dot(h, w2.astype(jnp.bfloat16),
                       preferred_element_type=jnp.float32) + b2

    p1 = branch(p["w1a"], p["b1a"], p["w2a"], p["b2a"])
    p2 = branch(p["w1b"], p["b1b"], p["w2b"], p["b2b"])
    return d, p1, p2


if __name__ == "__main__":
    B, d_penul, d_hidden, d_project = 8, 32, 128, 128

    key = jax.random.PRNGKey(0)
    k_feat, k_params = jax.random.split(key)
    features = jax.random.normal(k_feat, (B, d_penul), jnp.float32)
    params = make_params(k_params, d_penul, d_hidden, d_project)
    prepared = prepare_params(params)

    output, aux = base_discriminator_forward(features, prepared)
    output = jax.block_until_ready(output)
    proj = jax.block_until_ready(aux["projection"])
    proj2 = jax.block_until_ready(aux["projection2"])

    assert output.shape == (B, 1)
    assert proj.shape == (B, d_project)
    assert proj2.shape == (B, d_project)

    # Tight check against a reference using the same bf16/f32 precision choices.
    d_m, p1_m, p2_m = _matched_reference(features, params)
    assert jnp.allclose(output, d_m, atol=1e-3, rtol=1e-3)
    assert jnp.allclose(proj.astype(jnp.float32), p1_m, atol=1e-3, rtol=1e-3)
    assert jnp.allclose(proj2.astype(jnp.float32), p2_m, atol=1e-3, rtol=1e-3)

    # Loose check against the full-f32 module semantics (bf16 rounding tolerance).
    d_f, p1_f, p2_f = _f32_reference(features, params)
    assert jnp.allclose(output, d_f, atol=5e-2, rtol=5e-2)
    assert jnp.allclose(proj.astype(jnp.float32), p1_f, atol=5e-2, rtol=5e-2)
    assert jnp.allclose(proj2.astype(jnp.float32), p2_f, atol=5e-2, rtol=5e-2)

    print("KERNEL_OK")
</pallas_src>

<mosaic_0001>
module attributes {stable_mosaic.version = 11 : i64} {
  func.func @_disc_kernel(%arg0: i32, %arg1: memref<16x32xbf16, #tpu.memory_space<vmem>>, %arg2: memref<1x32xf32, #tpu.memory_space<vmem>>, %arg3: memref<1x1xf32, #tpu.memory_space<vmem>>, %arg4: memref<32x256xbf16, #tpu.memory_space<vmem>>, %arg5: memref<1x256xf32, #tpu.memory_space<vmem>>, %arg6: memref<256x256xbf16, #tpu.memory_space<vmem>>, %arg7: memref<1x256xf32, #tpu.memory_space<vmem>>, %arg8: memref<16x1xf32, #tpu.memory_space<vmem>>, %arg9: memref<16x256xf32, #tpu.memory_space<vmem>>) attributes {dimension_semantics = [#tpu.dimension_semantics<parallel>], iteration_bounds = array<i64: 1>, scalar_prefetch = 0 : i64, scratch_operands = 0 : i64, tpu.core_type = #tpu.core_type<tc>, window_params = [{transform_indices = @transform_0, window_bounds = array<i64: 16, 32>}, {pipeline_mode = #tpu.pipeline_mode<synchronous>, transform_indices = @transform_1, window_bounds = array<i64: 1, 32>}, {pipeline_mode = #tpu.pipeline_mode<synchronous>, transform_indices = @transform_2, window_bounds = array<i64: 1, 1>}, {pipeline_mode = #tpu.pipeline_mode<synchronous>, transform_indices = @transform_3, window_bounds = array<i64: 32, 256>}, {pipeline_mode = #tpu.pipeline_mode<synchronous>, transform_indices = @transform_4, window_bounds = array<i64: 1, 256>}, {pipeline_mode = #tpu.pipeline_mode<synchronous>, transform_indices = @transform_5, window_bounds = array<i64: 256, 256>}, {pipeline_mode = #tpu.pipeline_mode<synchronous>, transform_indices = @transform_6, window_bounds = array<i64: 1, 256>}, {transform_indices = @transform_7, window_bounds = array<i64: 16, 1>}, {transform_indices = @transform_8, window_bounds = array<i64: 16, 256>}]} {
    %c0 = arith.constant 0 : index
    %c0_0 = arith.constant 0 : index
    %0 = vector.load %arg1[%c0, %c0_0] : memref<16x32xbf16, #tpu.memory_space<vmem>>, vector<16x32xbf16>
    %1 = arith.extf %0 : vector<16x32xbf16> to vector<16x32xf32>
    %c0_1 = arith.constant 0 : index
    %c0_2 = arith.constant 0 : index
    %2 = vector.load %arg2[%c0_1, %c0_2] : memref<1x32xf32, #tpu.memory_space<vmem>>, vector<1x32xf32>
    %3 = vector.broadcast %2 : vector<1x32xf32> to vector<16x32xf32>
    %4 = arith.mulf %1, %3 : vector<16x32xf32>
    %cst = arith.constant dense<0.000000e+00> : vector<16xf32>
    %5 = vector.multi_reduction <add>, %4, %cst [1] : vector<16x32xf32> to vector<16xf32>
    %6 = vector.shape_cast %5 : vector<16xf32> to vector<16x1xf32>
    %c0_3 = arith.constant 0 : index
    %c0_4 = arith.constant 0 : index
    %7 = vector.load %arg3[%c0_3, %c0_4] : memref<1x1xf32, #tpu.memory_space<vmem>>, vector<1x1xf32>
    %8 = vector.broadcast %7 : vector<1x1xf32> to vector<16x1xf32>
    %9 = arith.addf %6, %8 : vector<16x1xf32>
    %c0_5 = arith.constant 0 : index
    %c0_6 = arith.constant 0 : index
    %10 = vector.load %arg8[%c0_5, %c0_6] : memref<16x1xf32, #tpu.memory_space<vmem>>, vector<16x1xf32>
    tpu.vector_store %arg8[%c0_5, %c0_6], %9 {strides = array<i32>} : memref<16x1xf32, #tpu.memory_space<vmem>>, vector<16x1xf32>,
    %c0_7 = arith.constant 0 : index
    %c0_8 = arith.constant 0 : index
    %11 = vector.load %arg4[%c0_7, %c0_8] : memref<32x256xbf16, #tpu.memory_space<vmem>>, vector<32x256xbf16>
    %cst_9 = arith.constant dense<0.000000e+00> : vector<16x256xf32>
    %12 = tpu.matmul %0, %11, %cst_9 {dimension_numbers = #tpu.dot_dimension_numbers<[1], [0], [0], [1], [0, 0, 1, 1], [], []>} : vector<16x32xbf16>, vector<32x256xbf16>, vector<16x256xf32> -> vector<16x256xf32>
    %c0_10 = arith.constant 0 : index
    %c0_11 = arith.constant 0 : index
    %13 = vector.load %arg5[%c0_10, %c0_11] : memref<1x256xf32, #tpu.memory_space<vmem>>, vector<1x256xf32>
    %14 = vector.broadcast %13 : vector<1x256xf32> to vector<16x256xf32>
    %15 = arith.addf %12, %14 : vector<16x256xf32>
    %cst_12 = arith.constant 1.000000e-01 : f32
    %16 = vector.broadcast %cst_12 : f32 to vector<16x256xf32>
    %17 = arith.mulf %16, %15 : vector<16x256xf32>
    %18 = arith.maximumf %15, %17 : vector<16x256xf32>
    %19 = arith.truncf %18 : vector<16x256xf32> to vector<16x256xbf16>
    %c0_13 = arith.constant 0 : index
    %c0_14 = arith.constant 0 : index
    %20 = vector.load %arg6[%c0_13, %c0_14] : memref<256x256xbf16, #tpu.memory_space<vmem>>, vector<256x256xbf16>
    %cst_15 = arith.constant dense<0.000000e+00> : vector<16x256xf32>
    %21 = tpu.matmul %19, %20, %cst_15 {dimension_numbers = #tpu.dot_dimension_numbers<[1], [0], [0], [1], [0, 0, 1, 1], [], []>} : vector<16x256xbf16>, vector<256x256xbf16>, vector<16x256xf32> -> vector<16x256xf32>
    %c0_16 = arith.constant 0 : index
    %c0_17 = arith.constant 0 : index
    %22 = vector.load %arg7[%c0_16, %c0_17] : memref<1x256xf32, #tpu.memory_space<vmem>>, vector<1x256xf32>
    %23 = vector.broadcast %22 : vector<1x256xf32> to vector<16x256xf32>
    %24 = arith.addf %21, %23 : vector<16x256xf32>
    %c0_18 = arith.constant 0 : index
    %c0_19 = arith.constant 0 : index
    %25 = vector.load %arg9[%c0_18, %c0_19] : memref<16x256xf32, #tpu.memory_space<vmem>>, vector<16x256xf32>
    tpu.vector_store %arg9[%c0_18, %c0_19], %24 {strides = array<i32>} : memref<16x256xf32, #tpu.memory_space<vmem>>, vector<16x256xf32>,
    return
  }
  func.func @transform_0(%arg0: i32) -> (i32, i32) {
    %c0_i32 = arith.constant 0 : i32
    %c0_i32_0 = arith.constant 0 : i32
    return %arg0, %c0_i32 : i32, i32
  }
  func.func @transform_1(%arg0: i32) -> (i32, i32) {
    %c0_i32 = arith.constant 0 : i32
    %c0_i32_0 = arith.constant 0 : i32
    %c0_i32_1 = arith.constant 0 : i32
    return %c0_i32, %c0_i32_0 : i32, i32
  }
  func.func @transform_2(%arg0: i32) -> (i32, i32) {
    %c0_i32 = arith.constant 0 : i32
    %c0_i32_0 = arith.constant 0 : i32
    %c0_i32_1 = arith.constant 0 : i32
    return %c0_i32, %c0_i32_0 : i32, i32
  }
  func.func @transform_3(%arg0: i32) -> (i32, i32) {
    %c0_i32 = arith.constant 0 : i32
    %c0_i32_0 = arith.constant 0 : i32
    %c0_i32_1 = arith.constant 0 : i32
    return %c0_i32, %c0_i32_0 : i32, i32
  }
  func.func @transform_4(%arg0: i32) -> (i32, i32) {
    %c0_i32 = arith.constant 0 : i32
    %c0_i32_0 = arith.constant 0 : i32
    %c0_i32_1 = arith.constant 0 : i32
    return %c0_i32, %c0_i32_0 : i32, i32
  }
  func.func @transform_5(%arg0: i32) -> (i32, i32) {
    %c0_i32 = arith.constant 0 : i32
    %c0_i32_0 = arith.constant 0 : i32
    %c0_i32_1 = arith.constant 0 : i32
    return %c0_i32, %c0_i32_0 : i32, i32
  }
  func.func @transform_6(%arg0: i32) -> (i32, i32) {
    %c0_i32 = arith.constant 0 : i32
    %c0_i32_0 = arith.constant 0 : i32
    %c0_i32_1 = arith.constant 0 : i32
    return %c0_i32, %c0_i32_0 : i32, i32
  }
  func.func @transform_7(%arg0: i32) -> (i32, i32) {
    %c0_i32 = arith.constant 0 : i32
    %c0_i32_0 = arith.constant 0 : i32
    return %arg0, %c0_i32 : i32, i32
  }
  func.func @transform_8(%arg0: i32) -> (i32, i32) {
    %c0_i32 = arith.constant 0 : i32
    %c0_i32_0 = arith.constant 0 : i32
    return %arg0, %c0_i32 : i32, i32
  }
}

module attributes {stable_mosaic.version = 11 : i64} {
  func.func @_disc_kernel(%arg0: i32, %arg1: memref<16x32xbf16, #tpu.memory_space<vmem>>, %arg2: memref<1x32xf32, #tpu.memory_space<vmem>>, %arg3: memref<1x1xf32, #tpu.memory_space<vmem>>, %arg4: memref<32x256xbf16, #tpu.memory_space<vmem>>, %arg5: memref<1x256xf32, #tpu.memory_space<vmem>>, %arg6: memref<256x256xbf16, #tpu.memory_space<vmem>>, %arg7: memref<1x256xf32, #tpu.memory_space<vmem>>, %arg8: memref<16x1xf32, #tpu.memory_space<vmem>>, %arg9: memref<16x256xf32, #tpu.memory_space<vmem>>) attributes {dimension_semantics = [#tpu.dimension_semantics<parallel>], iteration_bounds = array<i64: 1>, scalar_prefetch = 0 : i64, scratch_operands = 0 : i64, tpu.core_type = #tpu.core_type<tc>, window_params = [{transform_indices = @transform_0, window_bounds = array<i64: 16, 32>}, {pipeline_mode = #tpu.pipeline_mode<synchronous>, transform_indices = @transform_1, window_bounds = array<i64: 1, 32>}, {pipeline_mode = #tpu.pipeline_mode<synchronous>, transform_indices = @transform_2, window_bounds = array<i64: 1, 1>}, {pipeline_mode = #tpu.pipeline_mode<synchronous>, transform_indices = @transform_3, window_bounds = array<i64: 32, 256>}, {pipeline_mode = #tpu.pipeline_mode<synchronous>, transform_indices = @transform_4, window_bounds = array<i64: 1, 256>}, {pipeline_mode = #tpu.pipeline_mode<synchronous>, transform_indices = @transform_5, window_bounds = array<i64: 256, 256>}, {pipeline_mode = #tpu.pipeline_mode<synchronous>, transform_indices = @transform_6, window_bounds = array<i64: 1, 256>}, {transform_indices = @transform_7, window_bounds = array<i64: 16, 1>}, {transform_indices = @transform_8, window_bounds = array<i64: 16, 256>}]} {
    %c0 = arith.constant 0 : index
    %c0_0 = arith.constant 0 : index
    %0 = vector.load %arg1[%c0, %c0_0] : memref<16x32xbf16, #tpu.memory_space<vmem>>, vector<16x32xbf16>
    %1 = arith.extf %0 : vector<16x32xbf16> to vector<16x32xf32>
    %c0_1 = arith.constant 0 : index
    %c0_2 = arith.constant 0 : index
    %2 = vector.load %arg2[%c0_1, %c0_2] : memref<1x32xf32, #tpu.memory_space<vmem>>, vector<1x32xf32>
    %3 = vector.broadcast %2 : vector<1x32xf32> to vector<16x32xf32>
    %4 = arith.mulf %1, %3 : vector<16x32xf32>
    %cst = arith.constant dense<0.000000e+00> : vector<16xf32>
    %5 = vector.multi_reduction <add>, %4, %cst [1] : vector<16x32xf32> to vector<16xf32>
    %6 = vector.shape_cast %5 : vector<16xf32> to vector<16x1xf32>
    %c0_3 = arith.constant 0 : index
    %c0_4 = arith.constant 0 : index
    %7 = vector.load %arg3[%c0_3, %c0_4] : memref<1x1xf32, #tpu.memory_space<vmem>>, vector<1x1xf32>
    %8 = vector.broadcast %7 : vector<1x1xf32> to vector<16x1xf32>
    %9 = arith.addf %6, %8 : vector<16x1xf32>
    %c0_5 = arith.constant 0 : index
    %c0_6 = arith.constant 0 : index
    %10 = vector.load %arg8[%c0_5, %c0_6] : memref<16x1xf32, #tpu.memory_space<vmem>>, vector<16x1xf32>
    tpu.vector_store %arg8[%c0_5, %c0_6], %9 {strides = array<i32>} : memref<16x1xf32, #tpu.memory_space<vmem>>, vector<16x1xf32>,
    %c0_7 = arith.constant 0 : index
    %c0_8 = arith.constant 0 : index
    %11 = vector.load %arg4[%c0_7, %c0_8] : memref<32x256xbf16, #tpu.memory_space<vmem>>, vector<32x256xbf16>
    %cst_9 = arith.constant dense<0.000000e+00> : vector<16x256xf32>
    %12 = tpu.matmul %0, %11, %cst_9 {dimension_numbers = #tpu.dot_dimension_numbers<[1], [0], [0], [1], [0, 0, 1, 1], [], []>} : vector<16x32xbf16>, vector<32x256xbf16>, vector<16x256xf32> -> vector<16x256xf32>
    %c0_10 = arith.constant 0 : index
    %c0_11 = arith.constant 0 : index
    %13 = vector.load %arg5[%c0_10, %c0_11] : memref<1x256xf32, #tpu.memory_space<vmem>>, vector<1x256xf32>
    %14 = vector.broadcast %13 : vector<1x256xf32> to vector<16x256xf32>
    %15 = arith.addf %12, %14 : vector<16x256xf32>
    %cst_12 = arith.constant 1.000000e-01 : f32
    %16 = vector.broadcast %cst_12 : f32 to vector<16x256xf32>
    %17 = arith.mulf %16, %15 : vector<16x256xf32>
    %18 = arith.maximumf %15, %17 : vector<16x256xf32>
    %19 = arith.truncf %18 : vector<16x256xf32> to vector<16x256xbf16>
    %c0_13 = arith.constant 0 : index
    %c0_14 = arith.constant 0 : index
    %20 = vector.load %arg6[%c0_13, %c0_14] : memref<256x256xbf16, #tpu.memory_space<vmem>>, vector<256x256xbf16>
    %cst_15 = arith.constant dense<0.000000e+00> : vector<16x256xf32>
    %21 = tpu.matmul %19, %20, %cst_15 {dimension_numbers = #tpu.dot_dimension_numbers<[1], [0], [0], [1], [0, 0, 1, 1], [], []>} : vector<16x256xbf16>, vector<256x256xbf16>, vector<16x256xf32> -> vector<16x256xf32>
    %c0_16 = arith.constant 0 : index
    %c0_17 = arith.constant 0 : index
    %22 = vector.load %arg7[%c0_16, %c0_17] : memref<1x256xf32, #tpu.memory_space<vmem>>, vector<1x256xf32>
    %23 = vector.broadcast %22 : vector<1x256xf32> to vector<16x256xf32>
    %24 = arith.addf %21, %23 : vector<16x256xf32>
    %c0_18 = arith.constant 0 : index
    %c0_19 = arith.constant 0 : index
    %25 = vector.load %arg9[%c0_18, %c0_19] : memref<16x256xf32, #tpu.memory_space<vmem>>, vector<16x256xf32>
    tpu.vector_store %arg9[%c0_18, %c0_19], %24 {strides = array<i32>} : memref<16x256xf32, #tpu.memory_space<vmem>>, vector<16x256xf32>,
    return
  }
  func.func @transform_0(%arg0: i32) -> (i32, i32) {
    %c0_i32 = arith.constant 0 : i32
    %c0_i32_0 = arith.constant 0 : i32
    return %arg0, %c0_i32 : i32, i32
  }
  func.func @transform_1(%arg0: i32) -> (i32, i32) {
    %c0_i32 = arith.constant 0 : i32
    %c0_i32_0 = arith.constant 0 : i32
    %c0_i32_1 = arith.constant 0 : i32
    return %c0_i32, %c0_i32_0 : i32, i32
  }
  func.func @transform_2(%arg0: i32) -> (i32, i32) {
    %c0_i32 = arith.constant 0 : i32
    %c0_i32_0 = arith.constant 0 : i32
    %c0_i32_1 = arith.constant 0 : i32
    return %c0_i32, %c0_i32_0 : i32, i32
  }
  func.func @transform_3(%arg0: i32) -> (i32, i32) {
    %c0_i32 = arith.constant 0 : i32
    %c0_i32_0 = arith.constant 0 : i32
    %c0_i32_1 = arith.constant 0 : i32
    return %c0_i32, %c0_i32_0 : i32, i32
  }
  func.func @transform_4(%arg0: i32) -> (i32, i32) {
    %c0_i32 = arith.constant 0 : i32
    %c0_i32_0 = arith.constant 0 : i32
    %c0_i32_1 = arith.constant 0 : i32
    return %c0_i32, %c0_i32_0 : i32, i32
  }
  func.func @transform_5(%arg0: i32) -> (i32, i32) {
    %c0_i32 = arith.constant 0 : i32
    %c0_i32_0 = arith.constant 0 : i32
    %c0_i32_1 = arith.constant 0 : i32
    return %c0_i32, %c0_i32_0 : i32, i32
  }
  func.func @transform_6(%arg0: i32) -> (i32, i32) {
    %c0_i32 = arith.constant 0 : i32
    %c0_i32_0 = arith.constant 0 : i32
    %c0_i32_1 = arith.constant 0 : i32
    return %c0_i32, %c0_i32_0 : i32, i32
  }
  func.func @transform_7(%arg0: i32) -> (i32, i32) {
    %c0_i32 = arith.constant 0 : i32
    %c0_i32_0 = arith.constant 0 : i32
    return %arg0, %c0_i32 : i32, i32
  }
  func.func @transform_8(%arg0: i32) -> (i32, i32) {
    %c0_i32 = arith.constant 0 : i32
    %c0_i32_0 = arith.constant 0 : i32
    return %arg0, %c0_i32 : i32, i32
  }
}

</mosaic_0001>

<bundles_post_ra>
// kernel: tpu_custom_call.1
= control target key start
LH: loop header
LB: loop body
LE: loop exit
PB: predicated region body
PF: predicated region fallthrough
CT: control target
= control target key end

     0   :  { %s812_s0 = inlined_call_operand.hbm [shape: bf16[16,32], index: 0, kind: input, shape index: {}]   ;;  %s813_s1 = inlined_call_operand.vmem [shape: f32[1,32], index: 1, kind: input, shape index: {}]   ;;  %s814_s2 = inlined_call_operand.<no memory space> [shape: f32[1,1], index: 2, kind: input, shape index: {}]   ;;  %s815_s3 = inlined_call_operand.hbm [shape: bf16[32,256], index: 3, kind: input, shape index: {}]   ;;  %s816_s4 = inlined_call_operand.vmem [shape: f32[1,256], index: 4, kind: input, shape index: {}]   ;;  %s817_s5 = inlined_call_operand.hbm [shape: bf16[256,256], index: 5, kind: input, shape index: {}]   ;;  %s818_s6 = inlined_call_operand.vmem [shape: f32[1,256], index: 6, kind: input, shape index: {}]   ;;  %s819_s7 = inlined_call_operand.vmem [shape: f32[16,1], index: 7, kind: output, shape index: {0}]   ;;  %s820_s8 = inlined_call_operand.hbm [shape: f32[16,256], index: 8, kind: output, shape index: {1}]  }
   0x1   :  { %v14_v0 = vstv %s814_s2 }
   0x2   :  { %15 = vst [vmem:[#allocation2] sm:$0x1] %v14_v0 }
   0x3   :  { %16 = vsyncpa [#allocation4], 0 }
   0x4   :  { %17 = vsyncpa [#allocation7], 0 }
   0x5   :  { %18 = vsyncpa [#allocation5], 0  ;;  %s676_s29 = smov [#allocation6]   ;;  %s582_s11 = scalar_lea.hbm %s815_s3, 512 }
   0x6   :  { %s40_s30 = sshll.u32 %s676_s29, 4  ;;  %p583_p0 = scmp.ne.s32.totalorder %s815_s3, %s582_s11  ;;  %s41_s30 = int_to_ptr.vmem [resolvable:$true] %s40_s30 }
   0x7   :  { %p586_p1 = scmp.lt.u32.totalorder %s582_s11, %s815_s3 }
   0x9   :  { %p588_p2 = pnand %p586_p1, %p583_p0 }
   0xb   :  { %591 = shalt.err (!%p588_p2)
}
   0xc   :  { %s592_s2 = scalar_lea.vmem %s41_s30, 512  ;;  %p597_p4 = scmp.lt.s32.totalorder %s41_s30, %s41_s30 }
   0xd   :  { %p593_p3 = scmp.ne.s32.totalorder %s41_s30, %s592_s2  ;;  %p598_p5 = scmp.lt.s32.totalorder %s592_s2, %s592_s2 }
   0xf   :  { %p599_p6 = por %p598_p5, %p597_p4 }
  0x11   :  { %p600_p7 = pnand %p599_p6, %p593_p3 }
  0x13   :  { %603 = shalt.err (!%p600_p7)
}
  0x14   :  { %s677_s16 = smov 128   ;;  %s678_s17 = smov 8  }
  0x15   :  { %46 = dma.hbm_to_vmem [thread:$0]  %s815_s3, 512, %s41_s30, [#allocation7], %s677_s16, %s677_s16, %s678_s17  }
  0x16   :  { %s679_s20 = smov [#allocation3]   ;;  %s604_s24 = scalar_lea.hbm %s812_s0, 128 }
  0x17   :  { %s24_s21 = sshll.u32 %s679_s20, 4  ;;  %p605_p8 = scmp.ne.s32.totalorder %s812_s0, %s604_s24  ;;  %s25_s21 = int_to_ptr.vmem [resolvable:$true] %s24_s21 }
  0x18   :  { %p608_p9 = scmp.lt.u32.totalorder %s604_s24, %s812_s0 }
  0x1a   :  { %p610_p10 = pnand %p608_p9, %p605_p8 }
  0x1c   :  { %613 = shalt.err (!%p610_p10)
}
  0x1d   :  { %s614_s29 = scalar_lea.vmem %s25_s21, 128  ;;  %p619_p12 = scmp.lt.s32.totalorder %s25_s21, %s25_s21 }
  0x1e   :  { %p615_p11 = scmp.ne.s32.totalorder %s25_s21, %s614_s29  ;;  %p620_p13 = scmp.lt.s32.totalorder %s614_s29, %s614_s29 }
  0x20   :  { %p621_p0 = por %p620_p13, %p619_p12 }
  0x22   :  { %p622_p1 = pnand %p621_p0, %p615_p11 }
  0x24   :  { %625 = shalt.err (!%p622_p1)
}
  0x25   :  { %s680_s3 = smov 64   ;;  %s681_s30 = smov 4  }
  0x26   :  { %30 = dma.hbm_to_vmem [thread:$0]  %s812_s0, 128, %s25_s21, [#allocation4], %s680_s3, %s680_s3, %s681_s30  }
  0x27   :  { %s682_s11 = smov [#allocation8]   ;;  %s626_s15 = scalar_lea.hbm %s817_s5, 4096 }
  0x28   :  { %s54_s12 = sshll.u32 %s682_s11, 4  ;;  %p627_p2 = scmp.ne.s32.totalorder %s817_s5, %s626_s15  ;;  %s55_s12 = int_to_ptr.vmem [resolvable:$true] %s54_s12 }
  0x29   :  { %p630_p3 = scmp.lt.u32.totalorder %s626_s15, %s817_s5 }
  0x2b   :  { %p632_p4 = pnand %p630_p3, %p627_p2 }
  0x2d   :  { %635 = shalt.err (!%p632_p4)
}
  0x2e   :  { %s636_s22 = scalar_lea.vmem %s55_s12, 4096  ;;  %p641_p6 = scmp.lt.s32.totalorder %s55_s12, %s55_s12 }
  0x2f   :  { %p637_p5 = scmp.ne.s32.totalorder %s55_s12, %s636_s22  ;;  %p642_p7 = scmp.lt.s32.totalorder %s636_s22, %s636_s22 }
  0x31   :  { %p643_p8 = por %p642_p7, %p641_p6 }
  0x33   :  { %p644_p9 = pnand %p643_p8, %p637_p5 }
  0x35   :  { %647 = shalt.err (!%p644_p9)
}
  0x36   :  { %60 = dma.hbm_to_vmem [thread:$0]  %s817_s5, 4096, %s55_s12, [#allocation7], %s677_s16, %s677_s16, %s678_s17  }
  0x37   :  { %670 = dma.done.wait [#allocation4], 128  }
  0x38   :  { %671 = vsyncadd [#allocation4], 4294967168 }
  0x39   :  { %672 = dma.done.wait [#allocation7], 4608  }
  0x3a   :  { %673 = vsyncadd [#allocation7], 4294962688  ;;  %v683_v1 = vmov 0   ;;  %v526_v2 = vld [vmem:[#allocation6 + $0x4] ss:$8 sps:$4 sm:$0xff]   ;;  %v777_v6 = vld [vmem:[#allocation3] sm:$0xff]   ;;  %v111_v46 = vlaneseq }
  0x3b   :  { %181 = vmatprep.mubr.bf16.mxu0 %v683_v1  ;;  %v528_v3 = vld [vmem:[#allocation6] ss:$8 sps:$4 sm:$0xff]   ;;  %149 = vmatprep.subr.bf16.mxu0 %v526_v2  ;;  %v529_v4 = vld [vmem:[#allocation6 + $0x14] ss:$8 sps:$4 sm:$0xff]   ;;  %v531_v5 = vld [vmem:[#allocation6 + $0x10] ss:$8 sps:$4 sm:$0xff]   ;;  %v75_v39 = vunpack.c.l.bf16 %v777_v6  ;;  %v76_v41 = vunpack.c.h.bf16 %v777_v6 }
  0x3c   :  { %150 = vmatpush1.bf16.msra.mxu0 %v528_v3  ;;  %v533_v7 = vld [vmem:[#allocation8 + $0x4] ss:$8 sps:$4 sm:$0xff]   ;;  %v535_v8 = vld [vmem:[#allocation8] ss:$8 sps:$4 sm:$0xff]   ;;  %v536_v9 = vld [vmem:[#allocation8 + $0x14] ss:$8 sps:$4 sm:$0xff]  }
  0x3d   :  { %151 = vmatprep.subr.bf16.mxu0 %v529_v4  ;;  %406 = vmatprep.subr.bf16.mxu1 %v533_v7  ;;  %v538_v10 = vld [vmem:[#allocation8 + $0x10] ss:$8 sps:$4 sm:$0xff]   ;;  %vm86_vm0 = vcmask 261120   ;;  %v539_v11 = vld [vmem:[#allocation8 + $0x24] ss:$8 sps:$4 sm:$0xff]   ;;  %v112_v47 = vshrl.u32 %v111_v46, 7 }
  0x3e   :  { %407 = vmatpush1.bf16.msra.mxu1 %v535_v8  ;;  %v541_v12 = vld [vmem:[#allocation8 + $0x20] ss:$8 sps:$4 sm:$0xff]   ;;  %v542_v13 = vld [vmem:[#allocation8 + $0x34] ss:$8 sps:$4 sm:$0xff]   ;;  %v544_v14 = vld [vmem:[#allocation8 + $0x30] ss:$8 sps:$4 sm:$0xff]  }
  0x3f   :  { %408 = vmatprep.subr.bf16.mxu1 %v536_v9  ;;  %v545_v15 = vld [vmem:[#allocation8 + $0x44] ss:$8 sps:$4 sm:$0xff]   ;;  %v547_v16 = vld [vmem:[#allocation8 + $0x40] ss:$8 sps:$4 sm:$0xff]   ;;  %v548_v17 = vld [vmem:[#allocation8 + $0x54] ss:$8 sps:$4 sm:$0xff]  }
  0x40   :  { %152 = vmatpush1.bf16.msra.mxu0 %v531_v5  ;;  %v550_v18 = vld [vmem:[#allocation8 + $0x50] ss:$8 sps:$4 sm:$0xff]   ;;  %v551_v19 = vld [vmem:[#allocation8 + $0x64] ss:$8 sps:$4 sm:$0xff]   ;;  %v553_v20 = vld [vmem:[#allocation8 + $0x60] ss:$8 sps:$4 sm:$0xff]  }
  0x41   :  { %v554_v21 = vld [vmem:[#allocation8 + $0x74] ss:$8 sps:$4 sm:$0xff]   ;;  %v556_v22 = vld [vmem:[#allocation8 + $0x70] ss:$8 sps:$4 sm:$0xff]   ;;  %v557_v23 = vld [vmem:[#allocation8 + $0x84] ss:$8 sps:$4 sm:$0xff]  }
  0x42   :  { %409 = vmatpush1.bf16.msra.mxu1 %v538_v10  ;;  %v559_v24 = vld [vmem:[#allocation8 + $0x80] ss:$8 sps:$4 sm:$0xff]   ;;  %v560_v25 = vld [vmem:[#allocation8 + $0x94] ss:$8 sps:$4 sm:$0xff]   ;;  %v562_v26 = vld [vmem:[#allocation8 + $0x90] ss:$8 sps:$4 sm:$0xff]  }
  0x43   :  { %482 = vmatmul.mubr.msk.bf16.vlgmr.msra.gmra.mrb[0].mxu0 %vm86_vm0, %v777_v6  ;;  %410 = vmatprep.subr.bf16.mxu1 %v539_v11  ;;  %v563_v27 = vld [vmem:[#allocation8 + $0xa4] ss:$8 sps:$4 sm:$0xff]   ;;  %v565_v28 = vld [vmem:[#allocation8 + $0xa0] ss:$8 sps:$4 sm:$0xff]   ;;  %v566_v29 = vld [vmem:[#allocation8 + $0xb4] ss:$8 sps:$4 sm:$0xff]  }
  0x44   :  { %v568_v30 = vld [vmem:[#allocation8 + $0xb0] ss:$8 sps:$4 sm:$0xff]   ;;  %v569_v31 = vld [vmem:[#allocation8 + $0xc4] ss:$8 sps:$4 sm:$0xff]   ;;  %v571_v32 = vld [vmem:[#allocation8 + $0xc0] ss:$8 sps:$4 sm:$0xff]  }
  0x45   :  { %v572_v33 = vld [vmem:[#allocation8 + $0xd4] ss:$8 sps:$4 sm:$0xff]   ;;  %v574_v34 = vld [vmem:[#allocation8 + $0xd0] ss:$8 sps:$4 sm:$0xff]   ;;  %v575_v35 = vld [vmem:[#allocation8 + $0xe4] ss:$8 sps:$4 sm:$0xff]  }
  0x46   :  { %411 = vmatpush1.bf16.msra.mxu1 %v541_v12  ;;  %v577_v36 = vld [vmem:[#allocation8 + $0xe0] ss:$8 sps:$4 sm:$0xff]   ;;  %v578_v37 = vld [vmem:[#allocation8 + $0xf4] ss:$8 sps:$4 sm:$0xff]   ;;  %v580_v38 = vld [vmem:[#allocation8 + $0xf0] ss:$8 sps:$4 sm:$0xff]  }
  0x47   :  { %412 = vmatprep.subr.bf16.mxu1 %v542_v13  ;;  %v475_v40 = vld [vmem:[%s813_s1] ss:$0 sm:$0xff]  ;;  %v113_v48 = vsub.s32 0, %v112_v47  ;;  %v117_v50 = vsub.s32 1, %v112_v47  ;;  %vm102_vm1 = vcmask 7168   ;;  %s684_s28 = smov [#allocation9]  }
  0x48   :  { %v84_v42 = vmul.f32 %v475_v40, %v75_v39  ;;  %v85_v43 = vmul.f32 %v475_v40, %v76_v41  ;;  %v109_v49 = vld [vmem:[%s816_s4] sm:$0x3]  ;;  %s460_s29 = sshll.u32 %s684_s28, 4  ;;  %s461_s29 = int_to_ptr.vmem [resolvable:$true] %s460_s29 }
  0x49   :  { %v114_v51 = vrot.slane %v109_v49, %v113_v48  ;;  %v118_v52 = vrot.slane %v109_v49, %v117_v50  ;;  %v476_v7 = vld [vmem:[#allocation2] ss:$0 sm:$0xff]  ;;  %p653_p11 = scmp.lt.s32.totalorder %s461_s29, %s461_s29 }
  0x4a   :  { %413 = vmatpush1.bf16.msra.mxu1 %v544_v14  ;;  %v87_v44 = vsel %vm86_vm0, %v84_v42, 0.0  ;;  %v90_v45 = vsel %vm86_vm0, %v85_v43, 0.0  ;;  %v234_v12 = vld [vmem:[%s818_s6] sm:$0x3] }
  0x4b   :  { %414 = vmatprep.subr.bf16.mxu1 %v545_v15  ;;  %88 = vadd.xlane.f32.xlu0 %v87_v44  ;;  %v239_v13 = vrot.slane %v234_v12, %v113_v48  ;;  %v243_v14 = vrot.slane %v234_v12, %v117_v50 }
  0x4e   :  { %415 = vmatpush1.bf16.msra.mxu1 %v547_v16 }
  0x4f   :  { %416 = vmatprep.subr.bf16.mxu1 %v548_v17  ;;  %91 = vadd.xlane.f32.xlu0 %v90_v45 }
  0x52   :  { %417 = vmatpush1.bf16.msra.mxu1 %v550_v18 }
  0x53   :  { %418 = vmatprep.subr.bf16.mxu1 %v551_v19 }
  0x56   :  { %419 = vmatpush1.bf16.msra.mxu1 %v553_v20 }
  0x57   :  { %420 = vmatprep.subr.bf16.mxu1 %v554_v21 }
  0x5a   :  { %421 = vmatpush1.bf16.msra.mxu1 %v556_v22 }
  0x5b   :  { %422 = vmatprep.subr.bf16.mxu1 %v557_v23 }
  0x5e   :  { %423 = vmatpush1.bf16.msra.mxu1 %v559_v24 }
  0x5f   :  { %424 = vmatprep.subr.bf16.mxu1 %v560_v25 }
  0x62   :  { %425 = vmatpush1.bf16.msra.mxu1 %v562_v26 }
  0x63   :  { %426 = vmatprep.subr.bf16.mxu1 %v563_v27 }
  0x66   :  { %427 = vmatpush1.bf16.msra.mxu1 %v565_v28 }
  0x67   :  { %428 = vmatprep.subr.bf16.mxu1 %v566_v29 }
  0x6a   :  { %429 = vmatpush1.bf16.msra.mxu1 %v568_v30 }
  0x6b   :  { %430 = vmatprep.subr.bf16.mxu1 %v569_v31 }
  0x6e   :  { %431 = vmatpush1.bf16.msra.mxu1 %v571_v32 }
  0x6f   :  { %432 = vmatprep.subr.bf16.mxu1 %v572_v33 }
  0x72   :  { %433 = vmatpush1.bf16.msra.mxu1 %v574_v34 }
  0x73   :  { %434 = vmatprep.subr.bf16.mxu1 %v575_v35 }
  0x76   :  { %435 = vmatpush1.bf16.msra.mxu1 %v577_v36 }
  0x77   :  { %436 = vmatprep.subr.bf16.mxu1 %v578_v37 }
  0x7a   :  { %437 = vmatpush1.bf16.msra.mxu1 %v580_v38 }
  0xd8   :  { %v89_v8 = vpop.xlane.xlu0 %88 }
  0xd9   :  { %v100_v9 = vadd.f32 %v476_v7, %v89_v8 }
  0xdb   :  { %103 = vst.msk [vmem:[%s819_s7] sm:$0xff] %vm102_vm1, %v100_v9 }
  0xdc   :  { %v92_v10 = vpop.xlane.xlu0 %91 }
  0xdd   :  { %v101_v11 = vadd.f32 %v476_v7, %v92_v10 }
  0xdf   :  { %104 = vst.msk [vmem:[%s819_s7 + $0x8] sm:$0xff] %vm102_vm1, %v101_v11  ;;  %s648_s7 = scalar_lea.vmem %s461_s29, 512 }
  0xe0   :  { %p649_p10 = scmp.ne.s32.totalorder %s461_s29, %s648_s7  ;;  %p654_p12 = scmp.lt.s32.totalorder %s648_s7, %s648_s7 }
  0xe2   :  { %p655_p13 = por %p654_p12, %p653_p11 }
  0xe4   :  { %p656_p0 = pnand %p655_p13, %p649_p10 }
 0x116   :  { %v183_v53 = vpop.f32.mrb[0].mxu0 }
 0x117   :  { %v184_v54 = vadd.f32 %v183_v53, %v114_v51  ;;  %v185_v55 = vpop.f32.mrb[1].mxu0 }
 0x118   :  { %v186_v56 = vadd.f32 %v185_v55, %v118_v52  ;;  %v187_v57 = vpop.f32.mrb[2].mxu0 }
 0x119   :  { %v192_v58 = vmul.f32 0.1, %v184_v54  ;;  %v188_v59 = vadd.f32 %v187_v57, %v114_v51  ;;  %v189_v60 = vpop.f32.mrb[3].mxu0 }
 0x11a   :  { %v193_v61 = vmul.f32 0.1, %v186_v56  ;;  %v190_v62 = vadd.f32 %v189_v60, %v118_v52 }
 0x11b   :  { %v194_v63 = vmul.f32 0.1, %v188_v59  ;;  %v196_v1 = vmax.f32 %v184_v54, %v192_v58 }
 0x11c   :  { %v195_v0 = vmul.f32 0.1, %v190_v62  ;;  %v197_v3 = vmax.f32 %v186_v56, %v193_v61 }
 0x11d   :  { %v198_v2 = vmax.f32 %v188_v59, %v194_v63 }
 0x11e   :  { %v199_v4 = vmax.f32 %v190_v62, %v195_v0 }
 0x11f   :  { %v200_v5 = vpack.c.bf16 %v198_v2, %v196_v1 }
 0x120   :  { %v201_v6 = vpack.c.bf16 %v199_v4, %v197_v3 }
 0x122   :  { %438 = vmatprep.mubr.bf16.mxu1 %v201_v6 }
 0x123   :  { %439 = vmatmul.mubr.bf16.vlgmr.msra.gmra.mrb[0].mxu1 %v200_v5 }
 0x1f6   :  { %v440_v15 = vpop.f32.mrb[0].mxu1 }
 0x1f7   :  { %v441_v16 = vadd.f32 %v440_v15, %v239_v13  ;;  %v442_v17 = vpop.f32.mrb[1].mxu1 }
 0x1f8   :  { %v443_v18 = vadd.f32 %v442_v17, %v243_v14  ;;  %v444_v19 = vpop.f32.mrb[2].mxu1 }
 0x1f9   :  { %449 = vst [vmem:[#allocation9] sm:$0xff] %v441_v16  ;;  %v445_v20 = vadd.f32 %v444_v19, %v239_v13  ;;  %v446_v21 = vpop.f32.mrb[3].mxu1 }
 0x1fa   :  { %450 = vst [vmem:[#allocation9 + $0x8] sm:$0xff] %v443_v18  ;;  %v447_v22 = vadd.f32 %v446_v21, %v243_v14 }
 0x1fb   :  { %451 = vst [vmem:[#allocation9 + $0x10] sm:$0xff] %v445_v20 }
 0x1fc   :  { %452 = vst [vmem:[#allocation9 + $0x18] sm:$0xff] %v447_v22 }
 0x1fd   :  { %659 = shalt.err (!%p656_p0)
}
 0x1fe   :  { %s660_s30 = scalar_lea.hbm %s820_s8, 512 }
 0x1ff   :  { %p661_p1 = scmp.ne.s32.totalorder %s820_s8, %s660_s30  ;;  %p664_p2 = scmp.lt.u32.totalorder %s660_s30, %s820_s8 }
 0x201   :  { %p666_p3 = pnand %p664_p2, %p661_p1 }
 0x203   :  { %669 = shalt.err (!%p666_p3)
}
 0x204   :  { %s685_s13 = smov 256   ;;  %s686_s14 = smov 16  }
 0x205   :  { %466 = dma.vmem_to_hbm [thread:$0]  %s461_s29, 512, %s820_s8, [#allocation5], %s685_s13, %s685_s13, %s686_s14  }
 0x206   :  { %674 = dma.done.wait [#allocation5], 512  }
 0x207   :  { %675 = vsyncadd [#allocation5], 4294966784 }
 0x208   :  { %472 = vsyncpa [#allocation4], 1 }
 0x209   :  { %473 = vsyncpa [#allocation7], 1 }
 0x20a   :  { %474 = vsyncpa [#allocation5], 1 }

// kernel: tpu_custom_call.1
= control target key start
LH: loop header
LB: loop body
LE: loop exit
PB: predicated region body
PF: predicated region fallthrough
CT: control target
= control target key end

     0   :  { %s812_s0 = inlined_call_operand.hbm [shape: bf16[16,32], index: 0, kind: input, shape index: {}]   ;;  %s813_s1 = inlined_call_operand.vmem [shape: f32[1,32], index: 1, kind: input, shape index: {}]   ;;  %s814_s2 = inlined_call_operand.<no memory space> [shape: f32[1,1], index: 2, kind: input, shape index: {}]   ;;  %s815_s3 = inlined_call_operand.hbm [shape: bf16[32,256], index: 3, kind: input, shape index: {}]   ;;  %s816_s4 = inlined_call_operand.vmem [shape: f32[1,256], index: 4, kind: input, shape index: {}]   ;;  %s817_s5 = inlined_call_operand.hbm [shape: bf16[256,256], index: 5, kind: input, shape index: {}]   ;;  %s818_s6 = inlined_call_operand.vmem [shape: f32[1,256], index: 6, kind: input, shape index: {}]   ;;  %s819_s7 = inlined_call_operand.vmem [shape: f32[16,1], index: 7, kind: output, shape index: {0}]   ;;  %s820_s8 = inlined_call_operand.hbm [shape: f32[16,256], index: 8, kind: output, shape index: {1}]  }
   0x1   :  { %v14_v0 = vstv %s814_s2 }
   0x2   :  { %15 = vst [vmem:[#allocation2] sm:$0x1] %v14_v0 }
   0x3   :  { %16 = vsyncpa [#allocation4], 0 }
   0x4   :  { %17 = vsyncpa [#allocation7], 0 }
   0x5   :  { %18 = vsyncpa [#allocation5], 0  ;;  %s676_s29 = smov [#allocation6]   ;;  %s582_s11 = scalar_lea.hbm %s815_s3, 512 }
   0x6   :  { %s40_s30 = sshll.u32 %s676_s29, 4  ;;  %p583_p0 = scmp.ne.s32.totalorder %s815_s3, %s582_s11  ;;  %s41_s30 = int_to_ptr.vmem [resolvable:$true] %s40_s30 }
   0x7   :  { %p586_p1 = scmp.lt.u32.totalorder %s582_s11, %s815_s3 }
   0x9   :  { %p588_p2 = pnand %p586_p1, %p583_p0 }
   0xb   :  { %591 = shalt.err (!%p588_p2)
}
   0xc   :  { %s592_s2 = scalar_lea.vmem %s41_s30, 512  ;;  %p597_p4 = scmp.lt.s32.totalorder %s41_s30, %s41_s30 }
   0xd   :  { %p593_p3 = scmp.ne.s32.totalorder %s41_s30, %s592_s2  ;;  %p598_p5 = scmp.lt.s32.totalorder %s592_s2, %s592_s2 }
   0xf   :  { %p599_p6 = por %p598_p5, %p597_p4 }
  0x11   :  { %p600_p7 = pnand %p599_p6, %p593_p3 }
  0x13   :  { %603 = shalt.err (!%p600_p7)
}
  0x14   :  { %s677_s16 = smov 128   ;;  %s678_s17 = smov 8  }
  0x15   :  { %46 = dma.hbm_to_vmem [thread:$0]  %s815_s3, 512, %s41_s30, [#allocation7], %s677_s16, %s677_s16, %s678_s17  }
  0x16   :  { %s679_s20 = smov [#allocation3]   ;;  %s604_s24 = scalar_lea.hbm %s812_s0, 128 }
  0x17   :  { %s24_s21 = sshll.u32 %s679_s20, 4  ;;  %p605_p8 = scmp.ne.s32.totalorder %s812_s0, %s604_s24  ;;  %s25_s21 = int_to_ptr.vmem [resolvable:$true] %s24_s21 }
  0x18   :  { %p608_p9 = scmp.lt.u32.totalorder %s604_s24, %s812_s0 }
  0x1a   :  { %p610_p10 = pnand %p608_p9, %p605_p8 }
  0x1c   :  { %613 = shalt.err (!%p610_p10)
}
  0x1d   :  { %s614_s29 = scalar_lea.vmem %s25_s21, 128  ;;  %p619_p12 = scmp.lt.s32.totalorder %s25_s21, %s25_s21 }
  0x1e   :  { %p615_p11 = scmp.ne.s32.totalorder %s25_s21, %s614_s29  ;;  %p620_p13 = scmp.lt.s32.totalorder %s614_s29, %s614_s29 }
  0x20   :  { %p621_p0 = por %p620_p13, %p619_p12 }
  0x22   :  { %p622_p1 = pnand %p621_p0, %p615_p11 }
  0x24   :  { %625 = shalt.err (!%p622_p1)
}
  0x25   :  { %s680_s3 = smov 64   ;;  %s681_s30 = smov 4  }
  0x26   :  { %30 = dma.hbm_to_vmem [thread:$0]  %s812_s0, 128, %s25_s21, [#allocation4], %s680_s3, %s680_s3, %s681_s30  }
  0x27   :  { %s682_s11 = smov [#allocation8]   ;;  %s626_s15 = scalar_lea.hbm %s817_s5, 4096 }
  0x28   :  { %s54_s12 = sshll.u32 %s682_s11, 4  ;;  %p627_p2 = scmp.ne.s32.totalorder %s817_s5, %s626_s15  ;;  %s55_s12 = int_to_ptr.vmem [resolvable:$true] %s54_s12 }
  0x29   :  { %p630_p3 = scmp.lt.u32.totalorder %s626_s15, %s817_s5 }
  0x2b   :  { %p632_p4 = pnand %p630_p3, %p627_p2 }
  0x2d   :  { %635 = shalt.err (!%p632_p4)
}
  0x2e   :  { %s636_s22 = scalar_lea.vmem %s55_s12, 4096  ;;  %p641_p6 = scmp.lt.s32.totalorder %s55_s12, %s55_s12 }
  0x2f   :  { %p637_p5 = scmp.ne.s32.totalorder %s55_s12, %s636_s22  ;;  %p642_p7 = scmp.lt.s32.totalorder %s636_s22, %s636_s22 }
  0x31   :  { %p643_p8 = por %p642_p7, %p641_p6 }
  0x33   :  { %p644_p9 = pnand %p643_p8, %p637_p5 }
  0x35   :  { %647 = shalt.err (!%p644_p9)
}
  0x36   :  { %60 = dma.hbm_to_vmem [thread:$0]  %s817_s5, 4096, %s55_s12, [#allocation7], %s677_s16, %s677_s16, %s678_s17  }
  0x37   :  { %670 = dma.done.wait [#allocation4], 128  }
  0x38   :  { %671 = vsyncadd [#allocation4], 4294967168 }
  0x39   :  { %672 = dma.done.wait [#allocation7], 4608  }
  0x3a   :  { %673 = vsyncadd [#allocation7], 4294962688  ;;  %v683_v1 = vmov 0   ;;  %v526_v2 = vld [vmem:[#allocation6 + $0x4] ss:$8 sps:$4 sm:$0xff]   ;;  %v777_v6 = vld [vmem:[#allocation3] sm:$0xff]   ;;  %v111_v46 = vlaneseq }
  0x3b   :  { %181 = vmatprep.mubr.bf16.mxu0 %v683_v1  ;;  %v528_v3 = vld [vmem:[#allocation6] ss:$8 sps:$4 sm:$0xff]   ;;  %149 = vmatprep.subr.bf16.mxu0 %v526_v2  ;;  %v529_v4 = vld [vmem:[#allocation6 + $0x14] ss:$8 sps:$4 sm:$0xff]   ;;  %v531_v5 = vld [vmem:[#allocation6 + $0x10] ss:$8 sps:$4 sm:$0xff]   ;;  %v75_v39 = vunpack.c.l.bf16 %v777_v6  ;;  %v76_v41 = vunpack.c.h.bf16 %v777_v6 }
  0x3c   :  { %150 = vmatpush1.bf16.msra.mxu0 %v528_v3  ;;  %v533_v7 = vld [vmem:[#allocation8 + $0x4] ss:$8 sps:$4 sm:$0xff]   ;;  %v535_v8 = vld [vmem:[#allocation8] ss:$8 sps:$4 sm:$0xff]   ;;  %v536_v9 = vld [vmem:[#allocation8 + $0x14] ss:$8 sps:$4 sm:$0xff]  }
  0x3d   :  { %151 = vmatprep.subr.bf16.mxu0 %v529_v4  ;;  %406 = vmatprep.subr.bf16.mxu1 %v533_v7  ;;  %v538_v10 = vld [vmem:[#allocation8 + $0x10] ss:$8 sps:$4 sm:$0xff]   ;;  %vm86_vm0 = vcmask 261120   ;;  %v539_v11 = vld [vmem:[#allocation8 + $0x24] ss:$8 sps:$4 sm:$0xff]   ;;  %v112_v47 = vshrl.u32 %v111_v46, 7 }
  0x3e   :  { %407 = vmatpush1.bf16.msra.mxu1 %v535_v8  ;;  %v541_v12 = vld [vmem:[#allocation8 + $0x20] ss:$8 sps:$4 sm:$0xff]   ;;  %v542_v13 = vld [vmem:[#allocation8 + $0x34] ss:$8 sps:$4 sm:$0xff]   ;;  %v544_v14 = vld [vmem:[#allocation8 + $0x30] ss:$8 sps:$4 sm:$0xff]  }
  0x3f   :  { %408 = vmatprep.subr.bf16.mxu1 %v536_v9  ;;  %v545_v15 = vld [vmem:[#allocation8 + $0x44] ss:$8 sps:$4 sm:$0xff]   ;;  %v547_v16 = vld [vmem:[#allocation8 + $0x40] ss:$8 sps:$4 sm:$0xff]   ;;  %v548_v17 = vld [vmem:[#allocation8 + $0x54] ss:$8 sps:$4 sm:$0xff]  }
  0x40   :  { %152 = vmatpush1.bf16.msra.mxu0 %v531_v5  ;;  %v550_v18 = vld [vmem:[#allocation8 + $0x50] ss:$8 sps:$4 sm:$0xff]   ;;  %v551_v19 = vld [vmem:[#allocation8 + $0x64] ss:$8 sps:$4 sm:$0xff]   ;;  %v553_v20 = vld [vmem:[#allocation8 + $0x60] ss:$8 sps:$4 sm:$0xff]  }
  0x41   :  { %v554_v21 = vld [vmem:[#allocation8 + $0x74] ss:$8 sps:$4 sm:$0xff]   ;;  %v556_v22 = vld [vmem:[#allocation8 + $0x70] ss:$8 sps:$4 sm:$0xff]   ;;  %v557_v23 = vld [vmem:[#allocation8 + $0x84] ss:$8 sps:$4 sm:$0xff]  }
  0x42   :  { %409 = vmatpush1.bf16.msra.mxu1 %v538_v10  ;;  %v559_v24 = vld [vmem:[#allocation8 + $0x80] ss:$8 sps:$4 sm:$0xff]   ;;  %v560_v25 = vld [vmem:[#allocation8 + $0x94] ss:$8 sps:$4 sm:$0xff]   ;;  %v562_v26 = vld [vmem:[#allocation8 + $0x90] ss:$8 sps:$4 sm:$0xff]  }
  0x43   :  { %482 = vmatmul.mubr.msk.bf16.vlgmr.msra.gmra.mrb[0].mxu0 %vm86_vm0, %v777_v6  ;;  %410 = vmatprep.subr.bf16.mxu1 %v539_v11  ;;  %v563_v27 = vld [vmem:[#allocation8 + $0xa4] ss:$8 sps:$4 sm:$0xff]   ;;  %v565_v28 = vld [vmem:[#allocation8 + $0xa0] ss:$8 sps:$4 sm:$0xff]   ;;  %v566_v29 = vld [vmem:[#allocation8 + $0xb4] ss:$8 sps:$4 sm:$0xff]  }
  0x44   :  { %v568_v30 = vld [vmem:[#allocation8 + $0xb0] ss:$8 sps:$4 sm:$0xff]   ;;  %v569_v31 = vld [vmem:[#allocation8 + $0xc4] ss:$8 sps:$4 sm:$0xff]   ;;  %v571_v32 = vld [vmem:[#allocation8 + $0xc0] ss:$8 sps:$4 sm:$0xff]  }
  0x45   :  { %v572_v33 = vld [vmem:[#allocation8 + $0xd4] ss:$8 sps:$4 sm:$0xff]   ;;  %v574_v34 = vld [vmem:[#allocation8 + $0xd0] ss:$8 sps:$4 sm:$0xff]   ;;  %v575_v35 = vld [vmem:[#allocation8 + $0xe4] ss:$8 sps:$4 sm:$0xff]  }
  0x46   :  { %411 = vmatpush1.bf16.msra.mxu1 %v541_v12  ;;  %v577_v36 = vld [vmem:[#allocation8 + $0xe0] ss:$8 sps:$4 sm:$0xff]   ;;  %v578_v37 = vld [vmem:[#allocation8 + $0xf4] ss:$8 sps:$4 sm:$0xff]   ;;  %v580_v38 = vld [vmem:[#allocation8 + $0xf0] ss:$8 sps:$4 sm:$0xff]  }
  0x47   :  { %412 = vmatprep.subr.bf16.mxu1 %v542_v13  ;;  %v475_v40 = vld [vmem:[%s813_s1] ss:$0 sm:$0xff]  ;;  %v113_v48 = vsub.s32 0, %v112_v47  ;;  %v117_v50 = vsub.s32 1, %v112_v47  ;;  %vm102_vm1 = vcmask 7168   ;;  %s684_s28 = smov [#allocation9]  }
  0x48   :  { %v84_v42 = vmul.f32 %v475_v40, %v75_v39  ;;  %v85_v43 = vmul.f32 %v475_v40, %v76_v41  ;;  %v109_v49 = vld [vmem:[%s816_s4] sm:$0x3]  ;;  %s460_s29 = sshll.u32 %s684_s28, 4  ;;  %s461_s29 = int_to_ptr.vmem [resolvable:$true] %s460_s29 }
  0x49   :  { %v114_v51 = vrot.slane %v109_v49, %v113_v48  ;;  %v118_v52 = vrot.slane %v109_v49, %v117_v50  ;;  %v476_v7 = vld [vmem:[#allocation2] ss:$0 sm:$0xff]  ;;  %p653_p11 = scmp.lt.s32.totalorder %s461_s29, %s461_s29 }
  0x4a   :  { %413 = vmatpush1.bf16.msra.mxu1 %v544_v14  ;;  %v87_v44 = vsel %vm86_vm0, %v84_v42, 0.0  ;;  %v90_v45 = vsel %vm86_vm0, %v85_v43, 0.0  ;;  %v234_v12 = vld [vmem:[%s818_s6] sm:$0x3] }
  0x4b   :  { %414 = vmatprep.subr.bf16.mxu1 %v545_v15  ;;  %88 = vadd.xlane.f32.xlu0 %v87_v44  ;;  %v239_v13 = vrot.slane %v234_v12, %v113_v48  ;;  %v243_v14 = vrot.slane %v234_v12, %v117_v50 }
  0x4e   :  { %415 = vmatpush1.bf16.msra.mxu1 %v547_v16 }
  0x4f   :  { %416 = vmatprep.subr.bf16.mxu1 %v548_v17  ;;  %91 = vadd.xlane.f32.xlu0 %v90_v45 }
  0x52   :  { %417 = vmatpush1.bf16.msra.mxu1 %v550_v18 }
  0x53   :  { %418 = vmatprep.subr.bf16.mxu1 %v551_v19 }
  0x56   :  { %419 = vmatpush1.bf16.msra.mxu1 %v553_v20 }
  0x57   :  { %420 = vmatprep.subr.bf16.mxu1 %v554_v21 }
  0x5a   :  { %421 = vmatpush1.bf16.msra.mxu1 %v556_v22 }
  0x5b   :  { %422 = vmatprep.subr.bf16.mxu1 %v557_v23 }
  0x5e   :  { %423 = vmatpush1.bf16.msra.mxu1 %v559_v24 }
  0x5f   :  { %424 = vmatprep.subr.bf16.mxu1 %v560_v25 }
  0x62   :  { %425 = vmatpush1.bf16.msra.mxu1 %v562_v26 }
  0x63   :  { %426 = vmatprep.subr.bf16.mxu1 %v563_v27 }
  0x66   :  { %427 = vmatpush1.bf16.msra.mxu1 %v565_v28 }
  0x67   :  { %428 = vmatprep.subr.bf16.mxu1 %v566_v29 }
  0x6a   :  { %429 = vmatpush1.bf16.msra.mxu1 %v568_v30 }
  0x6b   :  { %430 = vmatprep.subr.bf16.mxu1 %v569_v31 }
  0x6e   :  { %431 = vmatpush1.bf16.msra.mxu1 %v571_v32 }
  0x6f   :  { %432 = vmatprep.subr.bf16.mxu1 %v572_v33 }
  0x72   :  { %433 = vmatpush1.bf16.msra.mxu1 %v574_v34 }
  0x73   :  { %434 = vmatprep.subr.bf16.mxu1 %v575_v35 }
  0x76   :  { %435 = vmatpush1.bf16.msra.mxu1 %v577_v36 }
  0x77   :  { %436 = vmatprep.subr.bf16.mxu1 %v578_v37 }
  0x7a   :  { %437 = vmatpush1.bf16.msra.mxu1 %v580_v38 }
  0xd8   :  { %v89_v8 = vpop.xlane.xlu0 %88 }
  0xd9   :  { %v100_v9 = vadd.f32 %v476_v7, %v89_v8 }
  0xdb   :  { %103 = vst.msk [vmem:[%s819_s7] sm:$0xff] %vm102_vm1, %v100_v9 }
  0xdc   :  { %v92_v10 = vpop.xlane.xlu0 %91 }
  0xdd   :  { %v101_v11 = vadd.f32 %v476_v7, %v92_v10 }
  0xdf   :  { %104 = vst.msk [vmem:[%s819_s7 + $0x8] sm:$0xff] %vm102_vm1, %v101_v11  ;;  %s648_s7 = scalar_lea.vmem %s461_s29, 512 }
  0xe0   :  { %p649_p10 = scmp.ne.s32.totalorder %s461_s29, %s648_s7  ;;  %p654_p12 = scmp.lt.s32.totalorder %s648_s7, %s648_s7 }
  0xe2   :  { %p655_p13 = por %p654_p12, %p653_p11 }
  0xe4   :  { %p656_p0 = pnand %p655_p13, %p649_p10 }
 0x116   :  { %v183_v53 = vpop.f32.mrb[0].mxu0 }
 0x117   :  { %v184_v54 = vadd.f32 %v183_v53, %v114_v51  ;;  %v185_v55 = vpop.f32.mrb[1].mxu0 }
 0x118   :  { %v186_v56 = vadd.f32 %v185_v55, %v118_v52  ;;  %v187_v57 = vpop.f32.mrb[2].mxu0 }
 0x119   :  { %v192_v58 = vmul.f32 0.1, %v184_v54  ;;  %v188_v59 = vadd.f32 %v187_v57, %v114_v51  ;;  %v189_v60 = vpop.f32.mrb[3].mxu0 }
 0x11a   :  { %v193_v61 = vmul.f32 0.1, %v186_v56  ;;  %v190_v62 = vadd.f32 %v189_v60, %v118_v52 }
 0x11b   :  { %v194_v63 = vmul.f32 0.1, %v188_v59  ;;  %v196_v1 = vmax.f32 %v184_v54, %v192_v58 }
 0x11c   :  { %v195_v0 = vmul.f32 0.1, %v190_v62  ;;  %v197_v3 = vmax.f32 %v186_v56, %v193_v61 }
 0x11d   :  { %v198_v2 = vmax.f32 %v188_v59, %v194_v63 }
 0x11e   :  { %v199_v4 = vmax.f32 %v190_v62, %v195_v0 }
 0x11f   :  { %v200_v5 = vpack.c.bf16 %v198_v2, %v196_v1 }
 0x120   :  { %v201_v6 = vpack.c.bf16 %v199_v4, %v197_v3 }
 0x122   :  { %438 = vmatprep.mubr.bf16.mxu1 %v201_v6 }
 0x123   :  { %439 = vmatmul.mubr.bf16.vlgmr.msra.gmra.mrb[0].mxu1 %v200_v5 }
 0x1f6   :  { %v440_v15 = vpop.f32.mrb[0].mxu1 }
 0x1f7   :  { %v441_v16 = vadd.f32 %v440_v15, %v239_v13  ;;  %v442_v17 = vpop.f32.mrb[1].mxu1 }
 0x1f8   :  { %v443_v18 = vadd.f32 %v442_v17, %v243_v14  ;;  %v444_v19 = vpop.f32.mrb[2].mxu1 }
 0x1f9   :  { %449 = vst [vmem:[#allocation9] sm:$0xff] %v441_v16  ;;  %v445_v20 = vadd.f32 %v444_v19, %v239_v13  ;;  %v446_v21 = vpop.f32.mrb[3].mxu1 }
 0x1fa   :  { %450 = vst [vmem:[#allocation9 + $0x8] sm:$0xff] %v443_v18  ;;  %v447_v22 = vadd.f32 %v446_v21, %v243_v14 }
 0x1fb   :  { %451 = vst [vmem:[#allocation9 + $0x10] sm:$0xff] %v445_v20 }
 0x1fc   :  { %452 = vst [vmem:[#allocation9 + $0x18] sm:$0xff] %v447_v22 }
 0x1fd   :  { %659 = shalt.err (!%p656_p0)
}
 0x1fe   :  { %s660_s30 = scalar_lea.hbm %s820_s8, 512 }
 0x1ff   :  { %p661_p1 = scmp.ne.s32.totalorder %s820_s8, %s660_s30  ;;  %p664_p2 = scmp.lt.u32.totalorder %s660_s30, %s820_s8 }
 0x201   :  { %p666_p3 = pnand %p664_p2, %p661_p1 }
 0x203   :  { %669 = shalt.err (!%p666_p3)
}
 0x204   :  { %s685_s13 = smov 256   ;;  %s686_s14 = smov 16  }
 0x205   :  { %466 = dma.vmem_to_hbm [thread:$0]  %s461_s29, 512, %s820_s8, [#allocation5], %s685_s13, %s685_s13, %s686_s14  }
 0x206   :  { %674 = dma.done.wait [#allocation5], 512  }
 0x207   :  { %675 = vsyncadd [#allocation5], 4294966784 }
 0x208   :  { %472 = vsyncpa [#allocation4], 1 }
 0x209   :  { %473 = vsyncpa [#allocation7], 1 }
 0x20a   :  { %474 = vsyncpa [#allocation5], 1 }

</bundles_post_ra>
